<compile_context>
chip_gen: v6e
topology: v6e:2x2x1
jax: 0.10.0
libtpu: 0.0.40
codegen_flags: <defaults>
</compile_context>

<pallas_src>
import jax
import jax.numpy as jnp
from jax import lax
from jax.experimental import pallas as pl
from jax.experimental.pallas import tpu as pltpu

HIDDEN = 128  # fixed by the module: nn.Linear(128, 128) -> nn.Linear(128, 1)


def _round_up(n, m):
    return ((n + m - 1) // m) * m


def _discriminator_kernel(x_ref, w1_ref, b1_ref, w2_ref, b2_ref, o_ref):
    # In-kernel bf16 cast of x (avoids a separate HBM convert pass).
    x = x_ref[...].astype(jnp.bfloat16)                               # (tb, 128)
    # Layer 1: MXU bf16 x bf16 -> f32 accumulate; bias + ReLU in f32 on the VPU.
    h = jnp.dot(x, w1_ref[...], preferred_element_type=jnp.float32)   # (tb, 128)
    h = jnp.maximum(h + b1_ref[...], 0.0)
    # Layer 2 on the MXU: (1,128) . (tb,128)^T -> (1, tb).  Batch stays on the
    # lane axis -> lane-dense store, no XLU cross-lane reduction.
    out = lax.dot_general(
        w2_ref[...], h.astype(jnp.bfloat16),
        dimension_numbers=(((1,), (1,)), ((), ())),
        preferred_element_type=jnp.float32)                           # (1, tb)
    o_ref[...] = (out + b2_ref[...]).astype(o_ref.dtype)


def discriminator_forward(x, w1, b1, w2, b2, *, tile_b=2048):
    """x: (B, 128) f32; w1: (128, 128) [in,out]; b1: (1, 128); w2: (128, 1); b2: (1, 1)."""
    B = x.shape[0]
    assert x.shape[1] == HIDDEN

    # Batch tile: multiple of 128 (lane-dense output block), capped at tile_b.
    tb = min(tile_b, _round_up(B, 128))
    tb = max(128, (tb // 128) * 128)
    # v7x megacore: prefer >= 2 parallel grid steps once the batch is big enough.
    if B > 256 and pl.cdiv(B, tb) < 2:
        tb = max(128, _round_up(pl.cdiv(B, 2), 128))
    n_tiles = pl.cdiv(B, tb)

    # No padded copy of x for large B: Pallas clamps the edge block; garbage
    # tail rows are computed but discarded by the final slice (no in-kernel
    # reduction ever touches them).  Only if the whole batch is smaller than a
    # single tile do we pad (tiny B, negligible cost).
    x_in = x
    if B < tb:
        x_in = jnp.pad(x, ((0, tb - B), (0, 0)))

    w1_bf = w1.astype(jnp.bfloat16)                      # (128,128), VMEM-resident
    w2_row = w2.reshape(1, HIDDEN).astype(jnp.bfloat16)  # (128,1) -> (1,128) row
    b1_f = b1.astype(jnp.float32)
    b2_f = b2.astype(jnp.float32)

    rows = n_tiles * tb
    cost = pl.CostEstimate(
        flops=2 * rows * HIDDEN * HIDDEN + 2 * rows * HIDDEN + 2 * rows * HIDDEN,
        transcendentals=0,
        bytes_accessed=(rows * HIDDEN * 4            # x (f32 read)
                        + HIDDEN * HIDDEN * 2        # w1 (bf16)
                        + HIDDEN * 4 + HIDDEN * 2 + 4  # b1, w2 row, b2
                        + rows * 4),                 # out (f32, lane-dense row)
    )

    out_row = pl.pallas_call(
        _discriminator_kernel,
        out_shape=jax.ShapeDtypeStruct((1, rows), jnp.float32),
        grid_spec=pltpu.PrefetchScalarGridSpec(
            num_scalar_prefetch=0,
            grid=(n_tiles,),
            in_specs=[
                pl.BlockSpec((tb, HIDDEN), lambda i: (i, 0)),      # x: streamed
                pl.BlockSpec((HIDDEN, HIDDEN), lambda i: (0, 0)),  # w1: resident
                pl.BlockSpec((1, HIDDEN), lambda i: (0, 0)),       # b1: resident
                pl.BlockSpec((1, HIDDEN), lambda i: (0, 0)),       # w2 row: resident
                pl.BlockSpec((1, 1), lambda i: (0, 0)),            # b2: resident
            ],
            out_specs=pl.BlockSpec((1, tb), lambda i: (0, i)),     # lane-dense
        ),
        compiler_params=pltpu.CompilerParams(
            dimension_semantics=("parallel",),
        ),
        cost_estimate=cost,
    )(x_in, w1_bf, b1_f, w2_row, b2_f)

    return out_row.reshape(-1)[:B].reshape(B, 1)


def init_params(key):
    """Deterministic synthetic parameters matching nn.Linear shapes.

    PyTorch stores Linear weight as (out, in); we store the transpose (in, out)
    so the kernel computes x @ W directly.
    """
    k1, k2, k3, k4 = jax.random.split(key, 4)
    bound1 = 1.0 / jnp.sqrt(HIDDEN)
    w1 = jax.random.uniform(k1, (HIDDEN, HIDDEN), jnp.float32, -bound1, bound1)
    b1 = jax.random.uniform(k2, (1, HIDDEN), jnp.float32, -bound1, bound1)
    w2 = jax.random.uniform(k3, (HIDDEN, 1), jnp.float32, -bound1, bound1)
    b2 = jax.random.uniform(k4, (1, 1), jnp.float32, -bound1, bound1)
    return w1, b1, w2, b2


def reference_forward_f32(x, w1, b1, w2, b2):
    h = jnp.maximum(x @ w1 + b1, 0.0)
    return h @ w2 + b2


def reference_forward_bf16(x, w1, b1, w2, b2):
    # Matches the kernel's bf16-MXU-input / f32-accumulate numerics.
    h = jnp.dot(x.astype(jnp.bfloat16), w1.astype(jnp.bfloat16),
                preferred_element_type=jnp.float32)
    h = jnp.maximum(h + b1, 0.0)
    return jnp.dot(h.astype(jnp.bfloat16), w2.astype(jnp.bfloat16),
                   preferred_element_type=jnp.float32) + b2


if __name__ == "__main__":
    key = jax.random.PRNGKey(0)
    kx, kx2, kp = jax.random.split(key, 3)
    w1, b1, w2, b2 = init_params(kp)

    # Small batch (single padded tile path).
    B = 8
    x = jax.random.normal(kx, (B, HIDDEN), jnp.float32)
    out = jax.block_until_ready(discriminator_forward(x, w1, b1, w2, b2))
    assert out.shape == (B, 1), out.shape
    assert jnp.allclose(out, reference_forward_bf16(x, w1, b1, w2, b2),
                        atol=2e-3, rtol=2e-3), "mismatch vs bf16 reference"
    assert jnp.allclose(out, reference_forward_f32(x, w1, b1, w2, b2),
                        atol=5e-2, rtol=5e-2), "mismatch vs f32 reference"

    # Ragged batch (multi-tile + clamped edge block, no pad path).
    B2 = 300
    x2 = jax.random.normal(kx2, (B2, HIDDEN), jnp.float32)
    out2 = jax.block_until_ready(discriminator_forward(x2, w1, b1, w2, b2))
    assert out2.shape == (B2, 1), out2.shape
    assert jnp.allclose(out2, reference_forward_bf16(x2, w1, b1, w2, b2),
                        atol=2e-3, rtol=2e-3), "mismatch vs bf16 reference (ragged)"
    assert jnp.allclose(out2, reference_forward_f32(x2, w1, b1, w2, b2),
                        atol=5e-2, rtol=5e-2), "mismatch vs f32 reference (ragged)"

    print("KERNEL_OK")
</pallas_src>

<mosaic_0001>
module attributes {stable_mosaic.version = 11 : i64} {
  func.func @_discriminator_kernel(%arg0: i32, %arg1: memref<128x128xf32, #tpu.memory_space<vmem>>, %arg2: memref<128x128xbf16, #tpu.memory_space<vmem>>, %arg3: memref<1x128xf32, #tpu.memory_space<vmem>>, %arg4: memref<1x128xbf16, #tpu.memory_space<vmem>>, %arg5: memref<1x1xf32, #tpu.memory_space<vmem>>, %arg6: memref<1x128xf32, #tpu.memory_space<vmem>>) attributes {dimension_semantics = [#tpu.dimension_semantics<parallel>], iteration_bounds = array<i64: 1>, scalar_prefetch = 0 : i64, scratch_operands = 0 : i64, tpu.core_type = #tpu.core_type<tc>, window_params = [{transform_indices = @transform_0, window_bounds = array<i64: 128, 128>}, {pipeline_mode = #tpu.pipeline_mode<synchronous>, transform_indices = @transform_1, window_bounds = array<i64: 128, 128>}, {pipeline_mode = #tpu.pipeline_mode<synchronous>, transform_indices = @transform_2, window_bounds = array<i64: 1, 128>}, {pipeline_mode = #tpu.pipeline_mode<synchronous>, transform_indices = @transform_3, window_bounds = array<i64: 1, 128>}, {pipeline_mode = #tpu.pipeline_mode<synchronous>, transform_indices = @transform_4, window_bounds = array<i64: 1, 1>}, {transform_indices = @transform_5, window_bounds = array<i64: 1, 128>}]} {
    %c0 = arith.constant 0 : index
    %c0_0 = arith.constant 0 : index
    %0 = vector.load %arg1[%c0, %c0_0] : memref<128x128xf32, #tpu.memory_space<vmem>>, vector<128x128xf32>
    %1 = arith.truncf %0 : vector<128x128xf32> to vector<128x128xbf16>
    %c0_1 = arith.constant 0 : index
    %c0_2 = arith.constant 0 : index
    %2 = vector.load %arg2[%c0_1, %c0_2] : memref<128x128xbf16, #tpu.memory_space<vmem>>, vector<128x128xbf16>
    %cst = arith.constant dense<0.000000e+00> : vector<128x128xf32>
    %3 = tpu.matmul %1, %2, %cst {dimension_numbers = #tpu.dot_dimension_numbers<[1], [0], [0], [1], [0, 0, 1, 1], [], []>} : vector<128x128xbf16>, vector<128x128xbf16>, vector<128x128xf32> -> vector<128x128xf32>
    %c0_3 = arith.constant 0 : index
    %c0_4 = arith.constant 0 : index
    %4 = vector.load %arg3[%c0_3, %c0_4] : memref<1x128xf32, #tpu.memory_space<vmem>>, vector<1x128xf32>
    %5 = vector.broadcast %4 : vector<1x128xf32> to vector<128x128xf32>
    %6 = arith.addf %3, %5 : vector<128x128xf32>
    %cst_5 = arith.constant 0.000000e+00 : f32
    %7 = vector.broadcast %cst_5 : f32 to vector<128x128xf32>
    %8 = arith.maximumf %6, %7 : vector<128x128xf32>
    %c0_6 = arith.constant 0 : index
    %c0_7 = arith.constant 0 : index
    %9 = vector.load %arg4[%c0_6, %c0_7] : memref<1x128xbf16, #tpu.memory_space<vmem>>, vector<1x128xbf16>
    %10 = arith.truncf %8 : vector<128x128xf32> to vector<128x128xbf16>
    %cst_8 = arith.constant dense<0.000000e+00> : vector<1x128xf32>
    %11 = tpu.matmul %9, %10, %cst_8 {dimension_numbers = #tpu.dot_dimension_numbers<[1], [1], [0], [0], [0, 0, 1, 0], [], []>} : vector<1x128xbf16>, vector<128x128xbf16>, vector<1x128xf32> -> vector<1x128xf32>
    %c0_9 = arith.constant 0 : index
    %c0_10 = arith.constant 0 : index
    %12 = vector.load %arg5[%c0_9, %c0_10] : memref<1x1xf32, #tpu.memory_space<vmem>>, vector<1x1xf32>
    %13 = vector.broadcast %12 : vector<1x1xf32> to vector<1x128xf32>
    %14 = arith.addf %11, %13 : vector<1x128xf32>
    %c0_11 = arith.constant 0 : index
    %c0_12 = arith.constant 0 : index
    %15 = vector.load %arg6[%c0_11, %c0_12] : memref<1x128xf32, #tpu.memory_space<vmem>>, vector<1x128xf32>
    tpu.vector_store %arg6[%c0_11, %c0_12], %14 {strides = array<i32>} : memref<1x128xf32, #tpu.memory_space<vmem>>, vector<1x128xf32>,
    return
  }
  func.func @transform_0(%arg0: i32) -> (i32, i32) {
    %c0_i32 = arith.constant 0 : i32
    %c0_i32_0 = arith.constant 0 : i32
    return %arg0, %c0_i32 : i32, i32
  }
  func.func @transform_1(%arg0: i32) -> (i32, i32) {
    %c0_i32 = arith.constant 0 : i32
    %c0_i32_0 = arith.constant 0 : i32
    %c0_i32_1 = arith.constant 0 : i32
    return %c0_i32, %c0_i32_0 : i32, i32
  }
  func.func @transform_2(%arg0: i32) -> (i32, i32) {
    %c0_i32 = arith.constant 0 : i32
    %c0_i32_0 = arith.constant 0 : i32
    %c0_i32_1 = arith.constant 0 : i32
    return %c0_i32, %c0_i32_0 : i32, i32
  }
  func.func @transform_3(%arg0: i32) -> (i32, i32) {
    %c0_i32 = arith.constant 0 : i32
    %c0_i32_0 = arith.constant 0 : i32
    %c0_i32_1 = arith.constant 0 : i32
    return %c0_i32, %c0_i32_0 : i32, i32
  }
  func.func @transform_4(%arg0: i32) -> (i32, i32) {
    %c0_i32 = arith.constant 0 : i32
    %c0_i32_0 = arith.constant 0 : i32
    %c0_i32_1 = arith.constant 0 : i32
    return %c0_i32, %c0_i32_0 : i32, i32
  }
  func.func @transform_5(%arg0: i32) -> (i32, i32) {
    %c0_i32 = arith.constant 0 : i32
    %c0_i32_0 = arith.constant 0 : i32
    return %c0_i32, %arg0 : i32, i32
  }
}

</mosaic_0001>

<bundles_post_ra>
// kernel: tpu_custom_call.1
= control target key start
LH: loop header
LB: loop body
LE: loop exit
PB: predicated region body
PF: predicated region fallthrough
CT: control target
= control target key end

     0   :  { %s574_s0 = inlined_call_operand.hbm [shape: f32[128,128], index: 0, kind: input, shape index: {}]   ;;  %s575_s1 = inlined_call_operand.hbm [shape: bf16[128,128], index: 1, kind: input, shape index: {}]   ;;  %s576_s2 = inlined_call_operand.vmem [shape: f32[1,128], index: 2, kind: input, shape index: {}]   ;;  %s577_s3 = inlined_call_operand.vmem [shape: bf16[1,128], index: 3, kind: input, shape index: {}]   ;;  %s578_s4 = inlined_call_operand.<no memory space> [shape: f32[1,1], index: 4, kind: input, shape index: {}]   ;;  %s579_s5 = inlined_call_operand.hbm [shape: f32[1,128], index: 5, kind: output, shape index: {}]  }
   0x1   :  { %v10_v0 = vstv %s578_s4 }
   0x2   :  { %11 = vst [vmem:[#allocation2] sm:$0x1] %v10_v0 }
   0x3   :  { %12 = vsyncpa [#allocation4], 0 }
   0x4   :  { %13 = vsyncpa [#allocation7], 0 }
   0x5   :  { %14 = vsyncpa [#allocation5], 0  ;;  %s507_s20 = smov [#allocation3]  }
   0x6   :  { %s20_s21 = sshll.u32 %s507_s20, 4  ;;  %s21_s21 = int_to_ptr.vmem [resolvable:$true] %s20_s21 }
   0x7   :  { %s449_s22 = scalar_lea.vmem %s21_s21, 2048  ;;  %p454_p1 = scmp.lt.s32.totalorder %s21_s21, %s21_s21 }
   0x8   :  { %p450_p0 = scmp.ne.s32.totalorder %s21_s21, %s449_s22  ;;  %p455_p2 = scmp.lt.s32.totalorder %s449_s22, %s449_s22 }
   0xa   :  { %p456_p3 = por %p455_p2, %p454_p1 }
   0xc   :  { %p457_p4 = pnand %p456_p3, %p450_p0 }
   0xe   :  { %460 = shalt.err (!%p457_p4)
}
   0xf   :  { %s508_s23 = smov 128   ;;  %s509_s24 = smov 8  }
  0x10   :  { %26 = dma.hbm_to_vmem [thread:$0]  %s574_s0, 2048, %s21_s21, [#allocation4], %s508_s23, %s508_s23, %s509_s24  }
  0x11   :  { %s510_s4 = smov [#allocation6]  }
  0x12   :  { %s32_s27 = sshll.u32 %s510_s4, 4  ;;  %s33_s27 = int_to_ptr.vmem [resolvable:$true] %s32_s27 }
  0x13   :  { %s469_s28 = scalar_lea.vmem %s33_s27, 1024  ;;  %p474_p6 = scmp.lt.s32.totalorder %s33_s27, %s33_s27 }
  0x14   :  { %p470_p5 = scmp.ne.s32.totalorder %s33_s27, %s469_s28  ;;  %p475_p7 = scmp.lt.s32.totalorder %s469_s28, %s469_s28 }
  0x16   :  { %p476_p8 = por %p475_p7, %p474_p6 }
  0x18   :  { %p477_p9 = pnand %p476_p8, %p470_p5 }
  0x1a   :  { %480 = shalt.err (!%p477_p9)
}
  0x1b   :  { %s511_s29 = smov 64   ;;  %s512_s30 = smov 4  }
  0x1c   :  { %38 = dma.hbm_to_vmem [thread:$0]  %s575_s1, 1024, %s33_s27, [#allocation7], %s511_s29, %s511_s29, %s512_s30  }
  0x1d   :  { %501 = dma.done.wait [#allocation4], 2048  }
  0x1e   :  { %502 = vsyncadd [#allocation4], 4294965248 }
  0x1f   :  { %503 = dma.done.wait [#allocation7], 1024  }
  0x20   :  { %504 = vsyncadd [#allocation7], 4294966272  ;;  %v433_v1 = vld [vmem:[#allocation6 + $0x38] sm:$0xff]   ;;  %v434_v2 = vld [vmem:[#allocation6 + $0x30] sm:$0xff]   ;;  %v513_v33 = vmov 0.0   ;;  %vm514_vm0 = vmmov 0  }
  0x21   :  { %370 = vmatprep.subr.bf16.mxu0 %v433_v1  ;;  %v435_v3 = vld [vmem:[#allocation6 + $0x28] sm:$0xff]   ;;  %v436_v4 = vld [vmem:[#allocation6 + $0x20] sm:$0xff]   ;;  %v437_v8 = vld [vmem:[#allocation6 + $0x18] sm:$0xff]   ;;  %402 = vmatprep.subr.bf16.mxu1 %v513_v33  ;;  %v515_v35 = vmov 0   ;;  %s516_s9 = smov [#allocation8]  }
  0x22   :  { %371 = vmatpush3.bf16.msra.mxu0 %v433_v1  ;;  %v52_v5 = vld [vmem:[#allocation3] sm:$0xff]  ;;  %v53_v6 = vld [vmem:[#allocation3 + $0x8] sm:$0xff]  ;;  %v438_v9 = vld [vmem:[#allocation6 + $0x10] sm:$0xff]   ;;  %418 = vmatprep.mubr.msk.bf16.mxu1 %vm514_vm0, %v513_v33  ;;  %s326_s10 = sshll.u32 %s516_s9, 4  ;;  %s327_s10 = int_to_ptr.vmem [resolvable:$true] %s326_s10 }
  0x23   :  { %372 = vmatprep.subr.bf16.mxu0 %v434_v2  ;;  %v68_v7 = vpack.c.bf16 %v53_v6, %v52_v5  ;;  %v439_v10 = vld [vmem:[#allocation6 + $0x8] sm:$0xff]   ;;  %v440_v11 = vld [vmem:[#allocation6] sm:$0xff]   ;;  %v54_v12 = vld [vmem:[#allocation3 + $0x10] sm:$0xff]  ;;  %432 = vset.pattern.permute.xlu0 %v515_v35  ;;  %s481_s11 = scalar_lea.vmem %s327_s10, 16  ;;  %s485_s12 = scalar_lea.vmem %s327_s10, 32 }
  0x24   :  { %v55_v13 = vld [vmem:[#allocation3 + $0x18] sm:$0xff]  ;;  %v56_v14 = vld [vmem:[#allocation3 + $0x20] sm:$0xff]  ;;  %v57_v15 = vld [vmem:[#allocation3 + $0x28] sm:$0xff]  ;;  %p482_p10 = scmp.ne.s32.totalorder %s327_s10, %s481_s11  ;;  %p486_p11 = scmp.lt.s32.totalorder %s327_s10, %s327_s10 }
  0x25   :  { %386 = vmatprep.mubr.bf16.mxu0 %v68_v7  ;;  %v69_v16 = vpack.c.bf16 %v55_v13, %v54_v12  ;;  %v70_v17 = vpack.c.bf16 %v57_v15, %v56_v14  ;;  %v58_v18 = vld [vmem:[#allocation3 + $0x30] sm:$0xff]  ;;  %v59_v19 = vld [vmem:[#allocation3 + $0x38] sm:$0xff]  ;;  %v60_v20 = vld [vmem:[#allocation3 + $0x40] sm:$0xff]  ;;  %p487_p12 = scmp.lt.s32.totalorder %s485_s12, %s481_s11 }
  0x26   :  { %373 = vmatpush3.bf16.msra.mxu0 %v434_v2  ;;  %v61_v21 = vld [vmem:[#allocation3 + $0x48] sm:$0xff]  ;;  %v71_v22 = vpack.c.bf16 %v59_v19, %v58_v18  ;;  %v62_v24 = vld [vmem:[#allocation3 + $0x50] sm:$0xff]  ;;  %v63_v25 = vld [vmem:[#allocation3 + $0x58] sm:$0xff] }
  0x27   :  { %374 = vmatprep.subr.bf16.mxu0 %v435_v3  ;;  %v72_v23 = vpack.c.bf16 %v61_v21, %v60_v20  ;;  %v64_v26 = vld [vmem:[#allocation3 + $0x60] sm:$0xff]  ;;  %v65_v27 = vld [vmem:[#allocation3 + $0x68] sm:$0xff]  ;;  %v73_v28 = vpack.c.bf16 %v63_v25, %v62_v24  ;;  %v66_v30 = vld [vmem:[#allocation3 + $0x70] sm:$0xff]  ;;  %p488_p13 = por %p487_p12, %p486_p11 }
  0x28   :  { %v74_v29 = vpack.c.bf16 %v65_v27, %v64_v26  ;;  %v67_v31 = vld [vmem:[#allocation3 + $0x78] sm:$0xff] }
  0x29   :  { %v75_v32 = vpack.c.bf16 %v67_v31, %v66_v30  ;;  %v269_v34 = vld [vmem:[#allocation2] sm:$0x1]  ;;  %v275_v30 = vlaneseq  ;;  %p489_p0 = pnand %p488_p13, %p482_p10 }
  0x2a   :  { %375 = vmatpush3.bf16.msra.mxu0 %v435_v3  ;;  %272 = vperm.xlu0 %432, %v269_v34   ;;  %v336_v37 = vld [vmem:[%s576_s2] ss:$0 sm:$0xff] }
  0x2b   :  { %376 = vmatprep.subr.bf16.mxu0 %v436_v4  ;;  %v276_v31 = vshrl.u32 %v275_v30, 7 }
  0x2e   :  { %377 = vmatpush3.bf16.msra.mxu0 %v436_v4 }
  0x2f   :  { %378 = vmatprep.subr.bf16.mxu0 %v437_v8 }
  0x32   :  { %379 = vmatpush3.bf16.msra.mxu0 %v437_v8 }
  0x33   :  { %380 = vmatprep.subr.bf16.mxu0 %v438_v9 }
  0x36   :  { %381 = vmatpush3.bf16.msra.mxu0 %v438_v9 }
  0x37   :  { %382 = vmatprep.subr.bf16.mxu0 %v439_v10 }
  0x3a   :  { %383 = vmatpush3.bf16.msra.mxu0 %v439_v10 }
  0x3b   :  { %384 = vmatprep.subr.bf16.mxu0 %v440_v11 }
  0x3e   :  { %385 = vmatpush3.bf16.msra.mxu0 %v440_v11 }
  0x41   :  { %387 = vmatmul.mubr.bf16.vlgmr.msra.gmra.mxu0 %v69_v16 }
  0x42   :  { %390 = vmatprep.mubr.bf16.mxu0 %v70_v17 }
  0x49   :  { %391 = vmatmul.mubr.bf16.gmra.mxu0 %v71_v22 }
  0x4a   :  { %394 = vmatprep.mubr.bf16.mxu0 %v72_v23 }
  0x51   :  { %395 = vmatmul.mubr.bf16.gmra.mxu0 %v73_v28 }
  0x52   :  { %398 = vmatprep.mubr.bf16.mxu0 %v74_v29  ;;  %v260_v29 = vld [vmem:[%s577_s3] sm:$0x1] }
  0x59   :  { %399 = vmatmul.mubr.bf16.gmra.mxu0 %v75_v32  ;;  %v277_v32 = vsub.s32 0, %v276_v31 }
  0xa5   :  { %v273_v34 = vpop.permute.xlu0 %272 }
  0xa6   :  { %v278_v35 = vrot.slane %v273_v34, %v277_v32 }
 0x101   :  { %v388_v36 = vpop.f32.mrf.mxu0 }
 0x102   :  { %v190_v39 = vadd.f32 %v388_v36, %v336_v37 }
 0x103   :  { %v181_v38 = vpop.f32.mrf.mxu0 }
 0x104   :  { %v182_v41 = vadd.f32 %v336_v37, %v181_v38  ;;  %v246_v44 = vmax.f32 %v190_v39, 0.0 }
 0x105   :  { %v389_v40 = vpop.f32.mrf.mxu0 }
 0x106   :  { %v193_v42 = vadd.f32 %v389_v40, %v336_v37  ;;  %v244_v48 = vmax.f32 %v182_v41, 0.0 }
 0x107   :  { %v184_v43 = vpop.f32.mrf.mxu0 }
 0x108   :  { %v247_v45 = vmax.f32 %v193_v42, 0.0  ;;  %v185_v46 = vadd.f32 %v336_v37, %v184_v43 }
 0x109   :  { %v392_v47 = vpop.f32.mrf.mxu0 }
 0x10a   :  { %v262_v49 = vpack.c.bf16 %v247_v45, %v246_v44  ;;  %v245_v50 = vmax.f32 %v185_v46, 0.0  ;;  %v206_v20 = vadd.f32 %v392_v47, %v336_v37 }
 0x10b   :  { %v197_v51 = vpop.f32.mrf.mxu0 }
 0x10c   :  { %v261_v52 = vpack.c.bf16 %v245_v50, %v244_v48  ;;  %v250_v22 = vmax.f32 %v206_v20, 0.0  ;;  %v198_v25 = vadd.f32 %v336_v37, %v197_v51 }
 0x10d   :  { %v393_v53 = vpop.f32.mrf.mxu0 }
 0x10e   :  { %v209_v18 = vadd.f32 %v393_v53, %v336_v37  ;;  %v248_v27 = vmax.f32 %v198_v25, 0.0 }
 0x10f   :  { %v200_v54 = vpop.f32.mrf.mxu0 }
 0x110   :  { %v251_v21 = vmax.f32 %v209_v18, 0.0  ;;  %v201_v24 = vadd.f32 %v336_v37, %v200_v54 }
 0x111   :  { %v396_v55 = vpop.f32.mrf.mxu0 }
 0x112   :  { %v222_v10 = vadd.f32 %v396_v55, %v336_v37  ;;  %v264_v23 = vpack.c.bf16 %v251_v21, %v250_v22  ;;  %v249_v26 = vmax.f32 %v201_v24, 0.0 }
 0x113   :  { %v213_v56 = vpop.f32.mrf.mxu0 }
 0x114   :  { %v254_v12 = vmax.f32 %v222_v10, 0.0  ;;  %v214_v15 = vadd.f32 %v336_v37, %v213_v56  ;;  %v263_v28 = vpack.c.bf16 %v249_v26, %v248_v27 }
 0x115   :  { %v397_v57 = vpop.f32.mrf.mxu0 }
 0x116   :  { %v225_v8 = vadd.f32 %v397_v57, %v336_v37  ;;  %v252_v17 = vmax.f32 %v214_v15, 0.0 }
 0x117   :  { %v216_v58 = vpop.f32.mrf.mxu0 }
 0x118   :  { %v255_v11 = vmax.f32 %v225_v8, 0.0  ;;  %v217_v14 = vadd.f32 %v336_v37, %v216_v58 }
 0x119   :  { %v400_v59 = vpop.f32.mrf.mxu0 }
 0x11a   :  { %v238_v61 = vadd.f32 %v400_v59, %v336_v37  ;;  %v266_v13 = vpack.c.bf16 %v255_v11, %v254_v12  ;;  %v253_v16 = vmax.f32 %v217_v14, 0.0 }
 0x11b   :  { %v229_v60 = vpop.f32.mrf.mxu0 }
 0x11c   :  { %v258_v1 = vmax.f32 %v238_v61, 0.0  ;;  %v230_v5 = vadd.f32 %v336_v37, %v229_v60  ;;  %v265_v19 = vpack.c.bf16 %v253_v16, %v252_v17 }
 0x11d   :  { %v401_v62 = vpop.f32.mrf.mxu0 }
 0x11e   :  { %v241_v63 = vadd.f32 %v401_v62, %v336_v37  ;;  %v256_v7 = vmax.f32 %v230_v5, 0.0 }
 0x11f   :  { %v232_v0 = vpop.f32.mrf.mxu0 }
 0x120   :  { %v259_v2 = vmax.f32 %v241_v63, 0.0  ;;  %v233_v3 = vadd.f32 %v336_v37, %v232_v0 }
 0x122   :  { %v268_v4 = vpack.c.bf16 %v259_v2, %v258_v1  ;;  %v257_v6 = vmax.f32 %v233_v3, 0.0 }
 0x124   :  { %403 = vmatpush3.bf16.xpose.msra.mxu1 %v268_v4  ;;  %v267_v9 = vpack.c.bf16 %v257_v6, %v256_v7 }
 0x125   :  { %404 = vmatprep.subr.bf16.mxu1 %v513_v33 }
 0x12c   :  { %405 = vmatpush3.bf16.xpose.msra.mxu1 %v267_v9 }
 0x12d   :  { %406 = vmatprep.subr.bf16.mxu1 %v513_v33 }
 0x134   :  { %407 = vmatpush3.bf16.xpose.msra.mxu1 %v266_v13 }
 0x135   :  { %408 = vmatprep.subr.bf16.mxu1 %v513_v33 }
 0x13c   :  { %409 = vmatpush3.bf16.xpose.msra.mxu1 %v265_v19 }
 0x13d   :  { %410 = vmatprep.subr.bf16.mxu1 %v513_v33 }
 0x144   :  { %411 = vmatpush3.bf16.xpose.msra.mxu1 %v264_v23 }
 0x145   :  { %412 = vmatprep.subr.bf16.mxu1 %v513_v33 }
 0x14c   :  { %413 = vmatpush3.bf16.xpose.msra.mxu1 %v263_v28 }
 0x14d   :  { %414 = vmatprep.subr.bf16.mxu1 %v513_v33 }
 0x154   :  { %415 = vmatpush3.bf16.xpose.msra.mxu1 %v262_v49 }
 0x155   :  { %416 = vmatprep.subr.bf16.mxu1 %v513_v33 }
 0x15c   :  { %417 = vmatpush3.bf16.xpose.msra.mxu1 %v261_v52 }
 0x163   :  { %419 = vmatmul.mubr.bf16.vlgmr.msra.gmra.mxu1 %v260_v29 }
 0x223   :  { %v313_v36 = vpop.f32.mrf.mxu1 }
 0x224   :  { %v314_v37 = vadd.f32 %v313_v36, %v278_v35 }
 0x225   :  { %v420_v38 = vpop.f32.mrf.mxu1 }
 0x226   :  { %319 = vst [vmem:[#allocation8] sm:$0x1] %v314_v37 }
 0x227   :  { %v316_v39 = vpop.f32.mrf.mxu1 }
 0x228   :  { %492 = shalt.err (!%p489_p0)
}
 0x229   :  { %329 = dma.vmem_to_hbm [thread:$0]  %s327_s10, 16, %s579_s5, [#allocation5]   ;;  %v421_v33 = vpop.f32.mrf.mxu1 }
 0x22a   :  { %505 = dma.done.wait [#allocation5], 16  }
 0x22b   :  { %506 = vsyncadd [#allocation5], 4294967280 }
 0x22c   :  { %333 = vsyncpa [#allocation4], 1 }
 0x22d   :  { %334 = vsyncpa [#allocation7], 1 }
 0x22e   :  { %335 = vsyncpa [#allocation5], 1 }

</bundles_post_ra>
